<compile_context>
chip_gen: v7x
topology: tpu7x:2x2x1
jax: 0.10.0
libtpu: 0.0.40
codegen_flags: <defaults>
</compile_context>

<pallas_src>
import functools

import jax
import jax.numpy as jnp
from jax.experimental import pallas as pl
from jax.experimental.pallas import tpu as pltpu


def _lin_kernel(x_ref, rho_ref, gamma_ref, beta_ref, o_ref, *, eps, c, hw):
    # x_ref block: (1, C, HW) -- one batch element, HW on lanes, C on sublanes.
    x = x_ref[...].astype(jnp.float32)

    # ---- single reduce pass: per-channel sum and sum-of-squares over HW ----
    ch_sum = jnp.sum(x, axis=2, keepdims=True)          # (1, C, 1)
    ch_sumsq = jnp.sum(x * x, axis=2, keepdims=True)    # (1, C, 1)

    # Instance-norm stats (per channel over H*W), unbiased (ddof=1).
    in_mean = ch_sum / hw
    in_var = (ch_sumsq - ch_sum * in_mean) / max(hw - 1, 1)
    in_var = jnp.maximum(in_var, 0.0)
    inv_in = jax.lax.rsqrt(in_var + eps)                # (1, C, 1)

    # Layer-norm stats (over C, H, W), derived from the per-channel partials.
    tot_sum = jnp.sum(ch_sum, axis=1, keepdims=True)    # (1, 1, 1)
    tot_sumsq = jnp.sum(ch_sumsq, axis=1, keepdims=True)
    chw = c * hw
    ln_mean = tot_sum / chw
    ln_var = (tot_sumsq - tot_sum * ln_mean) / max(chw - 1, 1)
    ln_var = jnp.maximum(ln_var, 0.0)
    inv_ln = jax.lax.rsqrt(ln_var + eps)                # (1, 1, 1)

    # ---- fold rho blend + affine into per-channel scale / bias ----
    rho = rho_ref[...].astype(jnp.float32)              # (1, C, 1)
    gamma = gamma_ref[...].astype(jnp.float32)          # (1, C, 1)
    beta = beta_ref[...].astype(jnp.float32)            # (1, C, 1)

    one_m_rho = 1.0 - rho
    scale = gamma * (rho * inv_in + one_m_rho * inv_ln)                      # (1, C, 1)
    bias = beta - gamma * (rho * in_mean * inv_in + one_m_rho * ln_mean * inv_ln)

    # ---- single apply pass: out = x * a[c] + b[c] (lane-dense vst) ----
    o_ref[...] = (x * scale + bias).astype(o_ref.dtype)


def lin_forward(x, rho, gamma, beta, eps=1e-5):
    """x: (B, C, H, W); rho/gamma/beta: (1, C, 1, 1). Returns (B, C, H, W)."""
    B, C, H, W = x.shape
    hw = H * W

    # Lane-dense layout: flatten spatial dims onto the lane axis.
    x2 = x.reshape(B, C, hw)
    rho2 = rho.reshape(1, C, 1)
    gamma2 = gamma.reshape(1, C, 1)
    beta2 = beta.reshape(1, C, 1)

    kernel = functools.partial(_lin_kernel, eps=eps, c=C, hw=hw)

    # Params are batch-invariant: index_map always returns block (0,0,0), so
    # Pallas fetches them once and keeps them resident across grid steps.
    param_spec = pl.BlockSpec((1, C, 1), lambda b: (0, 0, 0))
    slab_spec = pl.BlockSpec((1, C, hw), lambda b: (b, 0, 0))

    itemsize = jnp.dtype(x.dtype).itemsize
    cost = pl.CostEstimate(
        flops=6 * B * C * hw,
        transcendentals=B * (C + 1),
        bytes_accessed=2 * B * C * hw * itemsize,
    )

    out = pl.pallas_call(
        kernel,
        out_shape=jax.ShapeDtypeStruct((B, C, hw), x.dtype),
        grid_spec=pltpu.PrefetchScalarGridSpec(
            num_scalar_prefetch=0,
            grid=(B,),
            in_specs=[slab_spec, param_spec, param_spec, param_spec],
            out_specs=slab_spec,
        ),
        compiler_params=pltpu.CompilerParams(
            dimension_semantics=("parallel",),
        ),
        cost_estimate=cost,
    )(x2, rho2, gamma2, beta2)

    return out.reshape(B, C, H, W)


def lin_reference(x, rho, gamma, beta, eps=1e-5):
    # Pure-JAX reference matching the PyTorch module (torch.var is unbiased).
    in_mean = jnp.mean(x, axis=(2, 3), keepdims=True)
    in_var = jnp.var(x, axis=(2, 3), keepdims=True, ddof=1)
    out_in = (x - in_mean) / jnp.sqrt(in_var + eps)
    ln_mean = jnp.mean(x, axis=(1, 2, 3), keepdims=True)
    ln_var = jnp.var(x, axis=(1, 2, 3), keepdims=True, ddof=1)
    out_ln = (x - ln_mean) / jnp.sqrt(ln_var + eps)
    out = rho * out_in + (1.0 - rho) * out_ln
    return out * gamma + beta


if __name__ == "__main__":
    B, C, H, W = 2, 4, 16, 16
    key = jax.random.PRNGKey(0)
    kx, kr, kg, kb = jax.random.split(key, 4)

    x = jax.random.normal(kx, (B, C, H, W), dtype=jnp.float32)

    # Module init fills rho=0, gamma=1, beta=0; use non-trivial (deterministic)
    # values here so both the instance-norm and layer-norm paths are exercised.
    rho = jax.nn.sigmoid(jax.random.normal(kr, (1, C, 1, 1), dtype=jnp.float32))
    gamma = 1.0 + 0.1 * jax.random.normal(kg, (1, C, 1, 1), dtype=jnp.float32)
    beta = 0.1 * jax.random.normal(kb, (1, C, 1, 1), dtype=jnp.float32)

    out = lin_forward(x, rho, gamma, beta)
    out = jax.block_until_ready(out)

    ref = lin_reference(x, rho, gamma, beta)
    assert out.shape == (B, C, H, W)
    assert jnp.allclose(out, ref, atol=1e-4, rtol=1e-4), "mismatch vs reference"

    # Also check with the module's default parameter values (rho=0, gamma=1, beta=0).
    rho0 = jnp.zeros((1, C, 1, 1), jnp.float32)
    gamma0 = jnp.ones((1, C, 1, 1), jnp.float32)
    beta0 = jnp.zeros((1, C, 1, 1), jnp.float32)
    out0 = jax.block_until_ready(lin_forward(x, rho0, gamma0, beta0))
    ref0 = lin_reference(x, rho0, gamma0, beta0)
    assert jnp.allclose(out0, ref0, atol=1e-4, rtol=1e-4), "mismatch vs reference (defaults)"

    print("KERNEL_OK")
</pallas_src>

<mosaic_0001>
module attributes {stable_mosaic.version = 11 : i64} {
  func.func @_lin_kernel(%arg0: i32, %arg1: memref<1x4x256xf32, #tpu.memory_space<vmem>>, %arg2: memref<1x4x1xf32, #tpu.memory_space<vmem>>, %arg3: memref<1x4x1xf32, #tpu.memory_space<vmem>>, %arg4: memref<1x4x1xf32, #tpu.memory_space<vmem>>, %arg5: memref<1x4x256xf32, #tpu.memory_space<vmem>>) attributes {dimension_semantics = [#tpu.dimension_semantics<parallel>], iteration_bounds = array<i64: 2>, scalar_prefetch = 0 : i64, scratch_operands = 0 : i64, tpu.core_type = #tpu.core_type<tc>, window_params = [{transform_indices = @transform_0, window_bounds = array<i64: 1, 4, 256>}, {pipeline_mode = #tpu.pipeline_mode<synchronous>, transform_indices = @transform_1, window_bounds = array<i64: 1, 4, 1>}, {pipeline_mode = #tpu.pipeline_mode<synchronous>, transform_indices = @transform_2, window_bounds = array<i64: 1, 4, 1>}, {pipeline_mode = #tpu.pipeline_mode<synchronous>, transform_indices = @transform_3, window_bounds = array<i64: 1, 4, 1>}, {transform_indices = @transform_4, window_bounds = array<i64: 1, 4, 256>}]} {
    %c0 = arith.constant 0 : index
    %c0_0 = arith.constant 0 : index
    %c0_1 = arith.constant 0 : index
    %0 = vector.load %arg1[%c0, %c0_0, %c0_1] : memref<1x4x256xf32, #tpu.memory_space<vmem>>, vector<1x4x256xf32>
    %cst = arith.constant dense<0.000000e+00> : vector<1x4xf32>
    %1 = vector.multi_reduction <add>, %0, %cst [2] : vector<1x4x256xf32> to vector<1x4xf32>
    %2 = vector.shape_cast %1 : vector<1x4xf32> to vector<1x4x1xf32>
    %3 = arith.mulf %0, %0 : vector<1x4x256xf32>
    %cst_2 = arith.constant dense<0.000000e+00> : vector<1x4xf32>
    %4 = vector.multi_reduction <add>, %3, %cst_2 [2] : vector<1x4x256xf32> to vector<1x4xf32>
    %5 = vector.shape_cast %4 : vector<1x4xf32> to vector<1x4x1xf32>
    %cst_3 = arith.constant 2.560000e+02 : f32
    %6 = vector.broadcast %cst_3 : f32 to vector<1x4x1xf32>
    %7 = arith.divf %2, %6 : vector<1x4x1xf32>
    %8 = arith.mulf %2, %7 : vector<1x4x1xf32>
    %9 = arith.subf %5, %8 : vector<1x4x1xf32>
    %cst_4 = arith.constant 2.550000e+02 : f32
    %10 = vector.broadcast %cst_4 : f32 to vector<1x4x1xf32>
    %11 = arith.divf %9, %10 : vector<1x4x1xf32>
    %cst_5 = arith.constant 0.000000e+00 : f32
    %12 = vector.broadcast %cst_5 : f32 to vector<1x4x1xf32>
    %13 = arith.maximumf %11, %12 : vector<1x4x1xf32>
    %cst_6 = arith.constant 9.99999974E-6 : f32
    %14 = vector.broadcast %cst_6 : f32 to vector<1x4x1xf32>
    %15 = arith.addf %13, %14 : vector<1x4x1xf32>
    %16 = math.rsqrt %15 : vector<1x4x1xf32>
    %cst_7 = arith.constant dense<0.000000e+00> : vector<1x1xf32>
    %17 = vector.multi_reduction <add>, %2, %cst_7 [1] : vector<1x4x1xf32> to vector<1x1xf32>
    %18 = vector.shape_cast %17 : vector<1x1xf32> to vector<1x1x1xf32>
    %cst_8 = arith.constant dense<0.000000e+00> : vector<1x1xf32>
    %19 = vector.multi_reduction <add>, %5, %cst_8 [1] : vector<1x4x1xf32> to vector<1x1xf32>
    %20 = vector.shape_cast %19 : vector<1x1xf32> to vector<1x1x1xf32>
    %cst_9 = arith.constant 1.024000e+03 : f32
    %21 = vector.broadcast %cst_9 : f32 to vector<1x1x1xf32>
    %22 = arith.divf %18, %21 : vector<1x1x1xf32>
    %23 = arith.mulf %18, %22 : vector<1x1x1xf32>
    %24 = arith.subf %20, %23 : vector<1x1x1xf32>
    %cst_10 = arith.constant 1.023000e+03 : f32
    %25 = vector.broadcast %cst_10 : f32 to vector<1x1x1xf32>
    %26 = arith.divf %24, %25 : vector<1x1x1xf32>
    %cst_11 = arith.constant 0.000000e+00 : f32
    %27 = vector.broadcast %cst_11 : f32 to vector<1x1x1xf32>
    %28 = arith.maximumf %26, %27 : vector<1x1x1xf32>
    %cst_12 = arith.constant 9.99999974E-6 : f32
    %29 = vector.broadcast %cst_12 : f32 to vector<1x1x1xf32>
    %30 = arith.addf %28, %29 : vector<1x1x1xf32>
    %31 = math.rsqrt %30 : vector<1x1x1xf32>
    %c0_13 = arith.constant 0 : index
    %c0_14 = arith.constant 0 : index
    %c0_15 = arith.constant 0 : index
    %32 = vector.load %arg2[%c0_13, %c0_14, %c0_15] : memref<1x4x1xf32, #tpu.memory_space<vmem>>, vector<1x4x1xf32>
    %c0_16 = arith.constant 0 : index
    %c0_17 = arith.constant 0 : index
    %c0_18 = arith.constant 0 : index
    %33 = vector.load %arg3[%c0_16, %c0_17, %c0_18] : memref<1x4x1xf32, #tpu.memory_space<vmem>>, vector<1x4x1xf32>
    %c0_19 = arith.constant 0 : index
    %c0_20 = arith.constant 0 : index
    %c0_21 = arith.constant 0 : index
    %34 = vector.load %arg4[%c0_19, %c0_20, %c0_21] : memref<1x4x1xf32, #tpu.memory_space<vmem>>, vector<1x4x1xf32>
    %cst_22 = arith.constant 1.000000e+00 : f32
    %35 = vector.broadcast %cst_22 : f32 to vector<1x4x1xf32>
    %36 = arith.subf %35, %32 : vector<1x4x1xf32>
    %37 = arith.mulf %32, %16 : vector<1x4x1xf32>
    %38 = vector.broadcast %31 : vector<1x1x1xf32> to vector<1x4x1xf32>
    %39 = arith.mulf %36, %38 : vector<1x4x1xf32>
    %40 = arith.addf %37, %39 : vector<1x4x1xf32>
    %41 = arith.mulf %33, %40 : vector<1x4x1xf32>
    %42 = arith.mulf %32, %7 : vector<1x4x1xf32>
    %43 = arith.mulf %42, %16 : vector<1x4x1xf32>
    %44 = vector.broadcast %22 : vector<1x1x1xf32> to vector<1x4x1xf32>
    %45 = arith.mulf %36, %44 : vector<1x4x1xf32>
    %46 = vector.broadcast %31 : vector<1x1x1xf32> to vector<1x4x1xf32>
    %47 = arith.mulf %45, %46 : vector<1x4x1xf32>
    %48 = arith.addf %43, %47 : vector<1x4x1xf32>
    %49 = arith.mulf %33, %48 : vector<1x4x1xf32>
    %50 = arith.subf %34, %49 : vector<1x4x1xf32>
    %51 = vector.broadcast %41 : vector<1x4x1xf32> to vector<1x4x256xf32>
    %52 = arith.mulf %0, %51 : vector<1x4x256xf32>
    %53 = vector.broadcast %50 : vector<1x4x1xf32> to vector<1x4x256xf32>
    %54 = arith.addf %52, %53 : vector<1x4x256xf32>
    %c0_23 = arith.constant 0 : index
    %c0_24 = arith.constant 0 : index
    %c0_25 = arith.constant 0 : index
    %55 = vector.load %arg5[%c0_23, %c0_24, %c0_25] : memref<1x4x256xf32, #tpu.memory_space<vmem>>, vector<1x4x256xf32>
    tpu.vector_store %arg5[%c0_23, %c0_24, %c0_25], %54 {strides = array<i32>} : memref<1x4x256xf32, #tpu.memory_space<vmem>>, vector<1x4x256xf32>,
    return
  }
  func.func @transform_0(%arg0: i32) -> (i32, i32, i32) {
    %c0_i32 = arith.constant 0 : i32
    %c0_i32_0 = arith.constant 0 : i32
    %c0_i32_1 = arith.constant 0 : i32
    return %arg0, %c0_i32, %c0_i32_0 : i32, i32, i32
  }
  func.func @transform_1(%arg0: i32) -> (i32, i32, i32) {
    %c0_i32 = arith.constant 0 : i32
    %c0_i32_0 = arith.constant 0 : i32
    %c0_i32_1 = arith.constant 0 : i32
    %c0_i32_2 = arith.constant 0 : i32
    return %c0_i32, %c0_i32_0, %c0_i32_1 : i32, i32, i32
  }
  func.func @transform_2(%arg0: i32) -> (i32, i32, i32) {
    %c0_i32 = arith.constant 0 : i32
    %c0_i32_0 = arith.constant 0 : i32
    %c0_i32_1 = arith.constant 0 : i32
    %c0_i32_2 = arith.constant 0 : i32
    return %c0_i32, %c0_i32_0, %c0_i32_1 : i32, i32, i32
  }
  func.func @transform_3(%arg0: i32) -> (i32, i32, i32) {
    %c0_i32 = arith.constant 0 : i32
    %c0_i32_0 = arith.constant 0 : i32
    %c0_i32_1 = arith.constant 0 : i32
    %c0_i32_2 = arith.constant 0 : i32
    return %c0_i32, %c0_i32_0, %c0_i32_1 : i32, i32, i32
  }
  func.func @transform_4(%arg0: i32) -> (i32, i32, i32) {
    %c0_i32 = arith.constant 0 : i32
    %c0_i32_0 = arith.constant 0 : i32
    %c0_i32_1 = arith.constant 0 : i32
    return %arg0, %c0_i32, %c0_i32_0 : i32, i32, i32
  }
}

</mosaic_0001>

<bundles_post_ra>
// kernel: tpu_custom_call.1
= control target key start
LH: loop header
LB: loop body
LE: loop exit
PB: predicated region body
PF: predicated region fallthrough
CT: control target
= control target key end

     0   :  { %9 = vsyncpa [#allocation3], 0  ;;  %s778_s0 = inlined_call_operand.hbm [shape: f32[2,4,256], index: 0, kind: input, shape index: {}]   ;;  %s779_s1 = inlined_call_operand.vmem [shape: f32[1,4,1], index: 1, kind: input, shape index: {}]   ;;  %s780_s2 = inlined_call_operand.vmem [shape: f32[1,4,1], index: 2, kind: input, shape index: {}]   ;;  %s781_s3 = inlined_call_operand.vmem [shape: f32[1,4,1], index: 3, kind: input, shape index: {}]   ;;  %s782_s4 = inlined_call_operand.hbm [shape: f32[2,4,256], index: 4, kind: output, shape index: {}]  }
   0x1   :  { %11 = vsyncpa [#allocation3 + $0x1], 0 }
   0x2   :  { %12 = vsyncpa [#allocation4], 0 }
   0x3   :  { %14 = vsyncpa [#allocation4 + $0x1], 0  ;;  %s590_s15 = smov 0   ;;  %s592_s16 = smov 0  }
   0x4   :  { %s594_s17 = smov 0   ;;  %s596_s18 = smov 0  }
   0x5 LB: > { %s611_s19 = sadd.s32 4294967295, %s559_s18   ;;  %s392_s20 = sadd.s32 4294967294, %s559_s18   ;;  %s559_s18 = sphi %s596_s18, %s797_s18   ;;  %s555_s17 = sphi %s594_s17, %s796_s17   ;;  %s551_s16 = sphi %s592_s16, %s795_s16   ;;  %s547_s15 = sphi %s590_s15, %s794_s15  }
   0x6   : > { %s615_s21 = sadd.s32 1, %s559_s18   ;;  %s27_s22 = sadd.s32 1, %s555_s17 }
   0x7   : > { %s24_s23 = ssub.s32 %s559_s18, %s615_s21  ;;  %p34_p0 = scmp.ne.s32.totalorder %s555_s17, %s551_s16 }
   0x8   : > { %p25_p1 = scmp.eq.s32.totalorder %s24_s23, 0  ;;  %p35_p2 = scmp.eq.s32.totalorder %s559_s18, 0 }
   0x9   : > { %p40_p3 = scmp.ne.s32.totalorder %s551_s16, %s547_s15  ;;  %p41_p4 = scmp.eq.s32.totalorder %s611_s19, 0 }
   0xa   : > { %s627_s24 = scalar_select %p25_p1, %s555_s17, %s27_s22  }
   0xb   : > { %p629_p5 = por %p35_p2, %p34_p0  ;;  %p633_p6 = por %p41_p4, %p40_p3 }
   0xc   : > { %p127_p7 = scmp.eq.s32.totalorder %s611_s19, 1  ;;  %p133_p8 = scmp.eq.s32.totalorder %s392_s20, 1 }
   0xd   : > { %p420_p10 = scmp.lt.s32.totalorder %s559_s18, 2  ;;  %s162_s29 = sand.u32 1, %s555_s17  }
   0xe   : > { %p640_p11 = por %p127_p7, %p34_p0  ;;  %p644_p12 = por %p133_p8, %p40_p3 }
   0xf   : > { %s406_s30 = sshll.u32 %s559_s18, 7  ;;  %s395_s5 = sshll.u32 %s162_s29, 3 }
  0x10   : > { %s786_s27 = scalar_select %p640_p11, 1, 0 }
  0x11   : > { %s787_s28 = scalar_select %p644_p12, 1, 0 }
  0x12   : > { %s653_s8 = scalar_lea.hbm %s778_s0, %s406_s30  ;;  %s166_s9 = scalar_lea.vmem [#allocation2], %s395_s5 }
  0x13   : > { %s174_s10 = sshll.u32 %s166_s9, 4  ;;  %p657_p13 = pnand %p420_p10, %p629_p5  ;;  %s661_s10 = int_to_ptr.vmem [resolvable:$true] %s174_s10 }
  0x14   : > { %s163_s12 = scalar_lea.sflag [#allocation3], %s162_s29  ;;  %s463_s13 = scalar_lea.hbm %s653_s8, 128 }
  0x15   : > { %p464_p2 = scmp.ne.s32.totalorder %s653_s8, %s463_s13  ;;  %p465_p3 = pneg %p657_p13 }
  0x16   : > { %s468_s22 = scalar_lea.hbm %s778_s0, 256  ;;  %p469_p5 = scmp.lt.u32.totalorder %s653_s8, %s778_s0 }
  0x17   : > { %p466_p4 = pnand %p465_p3, %p464_p2  ;;  %p470_p8 = scmp.lt.u32.totalorder %s468_s22, %s463_s13 }
  0x18   : > { %p472_p9 = scmp.lt.u32.totalorder %s463_s13, %s653_s8 }
  0x19   : > { %p467_p7 = pneg %p466_p4  ;;  %p471_p10 = por %p470_p8, %p469_p5 }
  0x1b   : > { %p473_p0 = por %p472_p9, %p471_p10 }
  0x1d   : > { %p474_p1 = pnand %p473_p0, %p467_p7 }
  0x1f   : > { %477 = shalt.err (!%p474_p1)
}
  0x20   : > { %s478_s29 = scalar_lea.vmem %s661_s10, 128  ;;  %s561_s30 = smov [#allocation2]  }
  0x21   : > { %p479_p2 = scmp.ne.s32.totalorder %s661_s10, %s478_s29  ;;  %s483_s5 = sshll.u32 %s561_s30, 4  ;;  %s484_s5 = int_to_ptr.vmem [resolvable:$false] %s483_s5 }
  0x22   : > { %s485_s6 = scalar_lea.vmem %s484_s5, 256  ;;  %p486_p11 = scmp.lt.s32.totalorder %s661_s10, %s484_s5 }
  0x23   : > { %p481_p4 = pnand %p479_p2, %p465_p3  ;;  %p487_p5 = scmp.lt.s32.totalorder %s485_s6, %s478_s29 }
  0x25   : > { %p482_p12 = pneg %p481_p4  ;;  %p488_p8 = por %p487_p5, %p486_p11 }
  0x27   : > { %p489_p9 = pnand %p488_p8, %p482_p12 }
  0x29   : > { %492 = shalt.err (!%p489_p9)
}
  0x2a   : > { %415 = dma.hbm_to_vmem [thread:$0]  (!%p657_p13), %s653_s8, 128, %s661_s10, %s163_s12  }
  0x2b   : > { %p789_p0 = scmp.lt.s32.totalorder %s559_s18, 3  ;;  %p790_p1 = scmp.ge.s32.totalorder %s559_s18, 1 }
  0x2d   : > { %p180_p3 = pnand %p790_p1, %p789_p0 }
  0x2e   : > { %s695_s7 = sand.u32 (!%p180_p3), 1, %s551_s16  }
  0x2f   : > { %183 = sbr.rel (%p180_p3) target bundleno = 395 (0x18b), region = 36  ;;  %s399_s9 = sshll.u32 (!%p180_p3), %s695_s7, 3 }
  0x30   : > { %s186_s13 = scalar_lea.sflag (!%p180_p3), [#allocation3], %s695_s7  ;;  %s189_s11 = scalar_lea.vmem (!%p180_p3), [#allocation2], %s399_s9 }
  0x36   : > { %538 = dma.done.wait (%p633_p6), %s186_s13, 128  }
  0x37   : > { %540 = vsyncadd (%p633_p6), %s186_s13, 4294967168  ;;  %vm218_vm0 = vcmask 1043456   ;;  %v705_v0 = vld [vmem:[%s189_s11] sm:$0xff]  ;;  %v562_v10 = vmov 0   ;;  %v563_v56 = vmov 839922192   ;;  %v287_v58 = vlaneseq }
  0x38   : > { %v216_v1 = vcombine.high %v705_v0, %v705_v0  ;;  %v219_v2 = vsel %vm218_vm0, %v705_v0, 0.0  ;;  %v224_v3 = vmul.f32 %v705_v0, %v705_v0  ;;  %456 = vset.pattern.permute.xlu1 %v562_v10  ;;  %457 = vset.pattern.permute.xlu0 %v562_v10  ;;  %v265_v39 = vld [vmem:[%s779_s1] sm:$0xf]  ;;  %v285_v57 = vunpack.c.l.s4 %v563_v56  ;;  %s407_s22 = sshll.u32 %s611_s19, 7  ;;  %s213_s23 = scalar_lea.vmem [#allocation5], %s399_s9 }
  0x39   : > { %v268_v40 = vsub.f32 1.0, %v265_v39  ;;  %v266_v49 = vld [vmem:[%s780_s2] sm:$0xf]  ;;  %v288_v60 = vshrl.u32 %v287_v58, 7  ;;  %s322_s25 = sshll.u32 %s213_s23, 4  ;;  %s734_s5 = scalar_lea.hbm %s782_s4, %s407_s22  ;;  %s736_s25 = int_to_ptr.vmem [resolvable:$true] %s322_s25 }
  0x3a   : > { %v220_v4 = vsel %vm218_vm0, %v216_v1, 0.0  ;;  %v226_v5 = vcombine.high %v224_v3, %v224_v3  ;;  %v228_v6 = vsel %vm218_vm0, %v224_v3, 0.0  ;;  %v267_v54 = vld [vmem:[%s781_s3] sm:$0xf]  ;;  %v286_v59 = vunpack.c.0.s8 %v285_v57  ;;  %s308_s6 = scalar_lea.sflag [#allocation4], %s695_s7  ;;  %s493_s19 = scalar_lea.vmem %s736_s25, 128 }
  0x3b   : > { %v221_v7 = vadd.f32 %v220_v4, %v219_v2  ;;  %p494_p6 = scmp.ne.s32.totalorder %s736_s25, %s493_s19  ;;  %p791_p11 = scmp.ne.s32.totalorder %s786_s27, 0 }
  0x3c   : > { %v229_v8 = vsel %vm218_vm0, %v226_v5, 0.0  ;;  %v289_v61 = vsub.s32 %v286_v59, %v288_v60  ;;  %s564_s9 = smov [#allocation5]  }
  0x3d   : > { %222 = vadd.xlane.f32.xlu0 %v221_v7  ;;  %v230_v9 = vadd.f32 %v229_v8, %v228_v6  ;;  %p495_p12 = pnand %p494_p6, %p791_p11  ;;  %s497_s13 = sshll.u32 %s564_s9, 4  ;;  %s498_s13 = int_to_ptr.vmem [resolvable:$false] %s497_s13 }
  0x3e   : > { %s499_s11 = scalar_lea.vmem %s498_s13, 256  ;;  %p500_p7 = scmp.lt.s32.totalorder %s736_s25, %s498_s13 }
  0x3f   : > { %p496_p13 = pneg %p495_p12  ;;  %p501_p10 = scmp.lt.s32.totalorder %s499_s11, %s493_s19 }
  0x41   : > { %231 = vadd.xlane.f32.xlu0 %v230_v9  ;;  %p502_p2 = por %p501_p10, %p500_p7 }
  0x43   : > { %p503_p4 = pnand %p502_p2, %p496_p13 }
  0xca   : > { %v223_v11 = vpop.xlane.xlu0 %222 }
  0xcb   : > { %v234_v12 = vmul.f32 0.00390625, %v223_v11  ;;  %v242_v13 = vsel %vm218_vm0, %v223_v11, 0.0 }
  0xcc   : > { %v243_v14 = vrot.slane %v242_v13, 4 }
  0xcd   : > { %v235_v16 = vmul.f32 %v234_v12, %v223_v11  ;;  %v273_v42 = vmul.f32 %v265_v39, %v234_v12 }
  0xce   : > { %v244_v15 = vadd.f32 %v243_v14, %v242_v13  ;;  %v232_v17 = vpop.xlane.xlu0 %231 }
  0xcf   : > { %v249_v18 = vsel %vm218_vm0, %v232_v17, 0.0  ;;  %v236_v22 = vsub.f32 %v232_v17, %v235_v16 }
  0xd0   : > { %v245_v19 = vrot.slane %v244_v15, 2  ;;  %v250_v20 = vrot.slane %v249_v18, 4 }
  0xd1   : > { %v238_v27 = vmul.f32 0.003921569, %v236_v22 }
  0xd2   : > { %v246_v21 = vadd.f32 %v245_v19, %v244_v15  ;;  %v251_v23 = vadd.f32 %v250_v20, %v249_v18 }
  0xd3   : > { %v239_v32 = vmax.f32 %v238_v27, 0.0 }
  0xd4   : > { %v247_v24 = vrot.slane %v246_v21, 1  ;;  %v252_v25 = vrot.slane %v251_v23, 2 }
  0xd5   : > { %v240_v35 = vadd.f32 1e-05, %v239_v32 }
  0xd6   : > { %v248_v26 = vadd.f32 %v247_v24, %v246_v21  ;;  %v253_v28 = vadd.f32 %v252_v25, %v251_v23 }
  0xd7   : > { %459 = vrsqrt.f32 %v240_v35 }
  0xd8   : > { %v257_v29 = vmul.f32 0.0009765625, %v248_v26  ;;  %v254_v30 = vrot.slane %v253_v28, 1 }
  0xda   : > { %v258_v31 = vmul.f32 %v257_v29, %v248_v26  ;;  %v255_v33 = vadd.f32 %v254_v30, %v253_v28  ;;  %v275_v43 = vmul.f32 %v268_v40, %v257_v29 }
  0xdc   : > { %v259_v34 = vsub.f32 %v255_v33, %v258_v31 }
  0xde   : > { %v261_v36 = vmul.f32 0.0009775171, %v259_v34 }
  0xe0   : > { %v262_v37 = vmax.f32 %v261_v36, 0.0 }
  0xe1   : > { %v460_v41 = vpop.eup %459 }
  0xe2   : > { %v263_v38 = vadd.f32 1e-05, %v262_v37  ;;  %v269_v45 = vmul.f32 %v460_v41, %v265_v39  ;;  %v274_v47 = vmul.f32 %v460_v41, %v273_v42 }
  0xe4   : > { %461 = vrsqrt.f32 %v263_v38 }
  0xee   : > { %v462_v44 = vpop.eup %461 }
  0xef   : > { %v270_v46 = vmul.f32 %v462_v44, %v268_v40  ;;  %v276_v48 = vmul.f32 %v462_v44, %v275_v43 }
  0xf1   : > { %v271_v50 = vadd.f32 %v270_v46, %v269_v45  ;;  %v277_v51 = vadd.f32 %v276_v48, %v274_v47 }
  0xf3   : > { %v272_v52 = vmul.f32 %v271_v50, %v266_v49  ;;  %v278_v53 = vmul.f32 %v277_v51, %v266_v49 }
  0xf5   : > { %282 = vperm.xlu1 %456, %v272_v52   ;;  %v279_v55 = vsub.f32 %v267_v54, %v278_v53 }
  0xf9   : > { %295 = vperm.xlu1 %456, %v279_v55  }
 0x174   : > { %v283_v62 = vpop.permute.xlu1 %282 }
 0x175   : > { %v290_v63 = vrot.slane %v283_v62, %v289_v61 }
 0x177   : > { %v292_v2 = vmul.f32 %v290_v63, %v705_v0 }
 0x178   : > { %v296_v1 = vpop.permute.xlu1 %295 }
 0x179   : > { %v303_v3 = vrot.slane %v296_v1, %v289_v61 }
 0x17b   : > { %v305_v4 = vadd.f32 %v303_v3, %v292_v2 }
 0x17d   : > { %306 = vst [vmem:[%s213_s23] sm:$0xff] %v305_v4 }
 0x17e   : > { %506 = shalt.err (!%p503_p4)
}
 0x17f   : > { %s507_s7 = scalar_lea.hbm %s734_s5, 128  ;;  %s511_s10 = scalar_lea.hbm %s782_s4, 256 }
 0x180   : > { %p508_p5 = scmp.ne.s32.totalorder %s734_s5, %s507_s7  ;;  %p512_p0 = scmp.lt.u32.totalorder %s734_s5, %s782_s4 }
 0x181   : > { %p513_p1 = scmp.lt.u32.totalorder %s511_s10, %s507_s7  ;;  %p515_p6 = scmp.lt.u32.totalorder %s507_s7, %s734_s5 }
 0x182   : > { %p509_p8 = pnand %p508_p5, %p791_p11 }
 0x183   : > { %p514_p3 = por %p513_p1, %p512_p0 }
 0x184   : > { %p510_p9 = pneg %p509_p8 }
 0x185   : > { %p516_p12 = por %p515_p6, %p514_p3 }
 0x187   : > { %p517_p13 = pnand %p516_p12, %p510_p9 }
 0x189   : > { %520 = shalt.err (!%p517_p13)
}
 0x18a   : > { %410 = dma.vmem_to_hbm [thread:$0]  (%p791_p11), %s736_s25, 128, %s734_s5, %s308_s6  }
 0x18b PF: > { %s334_s20 = sand.u32 1, %s547_s15   ;;  %p792_p7 = scmp.ne.s32.totalorder %s787_s28, 0 }
 0x18c   : > { %p793_p10 = scmp.ge.s32.totalorder %s559_s18, 2  ;;  %s335_s22 = scalar_lea.sflag [#allocation4], %s334_s20 }
 0x18e   : > { %p417_p2 = pnand %p793_p10, %p792_p7 }
 0x190   : > { %542 = dma.done.wait (!%p417_p2), %s335_s22, 128  }
 0x191   : > { %544 = vsyncadd (!%p417_p2), %s335_s22, 4294967168  ;;  %p17_p4 = scmp.ge.s32.totalorder %s615_s21, 4   ;;  %s794_s15 = smov %s551_s16 }
 0x192   : > { %s795_s16 = smov %s555_s17  ;;  %s796_s17 = smov %s627_s24 }
 0x193   : > { %s797_s18 = smov %s615_s21  ;;  %19 = sbr.rel (!%p17_p4) target bundleno = 5 (0x5), region = 81 }
 0x19a   :  { %340 = vsyncpa [#allocation3], 1 }
 0x19b   :  { %342 = vsyncpa [#allocation3 + $0x1], 1 }
 0x19c   :  { %343 = vsyncpa [#allocation4], 1 }
 0x19d   :  { %345 = vsyncpa [#allocation4 + $0x1], 1 }

</bundles_post_ra>
